<compile_context>
chip_gen: v7x
topology: tpu7x:2x2x1
jax: 0.10.0
libtpu: 0.0.40
codegen_flags: <defaults>
</compile_context>

<pallas_src>
import functools

import jax
import jax.numpy as jnp
from jax.experimental import pallas as pl
from jax.experimental.pallas import tpu as pltpu

EPS = 1e-5                     # nn.BatchNorm2d default eps
_IO_DTYPE = jnp.bfloat16       # matmul operands + intermediate activations


# -----------------------------------------------------------------------------
# Tiling / compiler-param helpers
# -----------------------------------------------------------------------------
def _pick_tile(n, prefs):
    for p in prefs:
        if n >= p and n % p == 0:
            return p
    return n


def _choose_matmul_tiles(rows, k, cout):
    # 256-wide output tiles fill the v6e/v7x 256x256 MXU; fall back to 128
    # (v5e MXU width), else the full (small) channel count.
    tn = _pick_tile(cout, (256, 128))
    tm = _pick_tile(rows, (512, 256, 128, 64, 32, 16, 8))

    def resident(tm_):
        # double-buffered bf16 x / w / y blocks + f32 stats blocks + f32 temp
        return (2 * (tm_ * k + k * tn + tm_ * tn) * 2
                + 2 * 2 * tn * 4
                + tm_ * tn * 4)

    # Budget safe for v7x (64 MiB physical VMEM, 32 MiB scoped default).
    budget = 24 * 1024 * 1024
    while resident(tm) > budget and tm % 16 == 0:
        tm //= 2
    return tm, tn, resident(tm)


def _compiler_params(resident_bytes, semantics):
    limit = int(min(max(2 * resident_bytes, 16 << 20), 48 << 20))
    return pltpu.CompilerParams(dimension_semantics=semantics,
                                vmem_limit_bytes=limit)


# -----------------------------------------------------------------------------
# Pass 1: tiled matmul + per-channel BN statistics (sum, sum of squares)
# -----------------------------------------------------------------------------
def _matmul_stats_kernel(x_ref, w_ref, y_ref, sum_ref, ssq_ref):
    # grid = (col_tiles, row_tiles); row axis (program_id(1)) is the BN
    # reduction axis -> stats outputs stay VMEM-resident across it.
    i = pl.program_id(1)

    y = jnp.dot(x_ref[...], w_ref[...], preferred_element_type=jnp.float32)

    @pl.when(i == 0)
    def _():
        sum_ref[...] = jnp.zeros_like(sum_ref)
        ssq_ref[...] = jnp.zeros_like(ssq_ref)

    sum_ref[...] += jnp.sum(y, axis=0, keepdims=True)
    ssq_ref[...] += jnp.sum(y * y, axis=0, keepdims=True)

    y_ref[...] = y.astype(y_ref.dtype)


def matmul_stats(x, w):
    rows, k = x.shape
    cout = w.shape[1]
    tm, tn, resident = _choose_matmul_tiles(rows, k, cout)
    ni, nj = rows // tm, cout // tn

    flops = int(2 * rows * k * cout)
    bytes_accessed = int((rows * k + k * cout + rows * cout) * 2 + 2 * cout * 4)

    y, s, ss = pl.pallas_call(
        _matmul_stats_kernel,
        out_shape=(
            jax.ShapeDtypeStruct((rows, cout), _IO_DTYPE),
            jax.ShapeDtypeStruct((1, cout), jnp.float32),
            jax.ShapeDtypeStruct((1, cout), jnp.float32),
        ),
        grid_spec=pltpu.PrefetchScalarGridSpec(
            num_scalar_prefetch=0,
            grid=(nj, ni),
            in_specs=[
                pl.BlockSpec((tm, k), lambda j, i: (i, 0)),
                pl.BlockSpec((k, tn), lambda j, i: (0, j)),
            ],
            out_specs=(
                pl.BlockSpec((tm, tn), lambda j, i: (i, j)),
                pl.BlockSpec((1, tn), lambda j, i: (0, j)),
                pl.BlockSpec((1, tn), lambda j, i: (0, j)),
            ),
        ),
        compiler_params=_compiler_params(resident, ("parallel", "arbitrary")),
        cost_estimate=pl.CostEstimate(flops=flops, transcendentals=0,
                                      bytes_accessed=bytes_accessed),
    )(x, w)

    mean = s[0] / rows
    # biased variance; clamp to avoid tiny negatives from cancellation
    var = jnp.maximum(ss[0] / rows - mean * mean, 0.0)
    return y, mean, var


# -----------------------------------------------------------------------------
# Pass 2: tiled normalize (+ optional residual add) (+ optional ReLU)
# -----------------------------------------------------------------------------
def _scale_bias_kernel(y_ref, s_ref, b_ref, o_ref, *, relu):
    out = y_ref[...].astype(jnp.float32) * s_ref[...] + b_ref[...]
    if relu:
        out = jnp.maximum(out, 0.0)
    o_ref[...] = out.astype(o_ref.dtype)


def _scale_bias_add_relu_kernel(y_ref, s_ref, b_ref, r_ref, o_ref):
    out = y_ref[...].astype(jnp.float32) * s_ref[...] + b_ref[...]
    out = out + r_ref[...].astype(jnp.float32)
    o_ref[...] = jnp.maximum(out, 0.0).astype(o_ref.dtype)


def scale_bias_act(y, scale, bias, *, relu, residual=None, out_dtype=_IO_DTYPE):
    rows, cout = y.shape
    tn = _pick_tile(cout, (256, 128))
    tm = _pick_tile(rows, (1024, 512, 256, 128, 64, 32, 16, 8))
    ni, nj = rows // tm, cout // tn

    scale2 = scale.reshape(1, cout).astype(jnp.float32)
    bias2 = bias.reshape(1, cout).astype(jnp.float32)

    in_specs = [
        pl.BlockSpec((tm, tn), lambda j, i: (i, j)),
        pl.BlockSpec((1, tn), lambda j, i: (0, j)),
        pl.BlockSpec((1, tn), lambda j, i: (0, j)),
    ]
    args = [y, scale2, bias2]
    bytes_accessed = rows * cout * 2 + rows * cout * jnp.dtype(out_dtype).itemsize
    if residual is not None:
        kernel = _scale_bias_add_relu_kernel
        in_specs.append(pl.BlockSpec((tm, tn), lambda j, i: (i, j)))
        args.append(residual)
        bytes_accessed += rows * cout * 2
    else:
        kernel = functools.partial(_scale_bias_kernel, relu=relu)

    resident = 2 * (3 * tm * tn * 2 + 2 * tn * 4) + tm * tn * 4

    return pl.pallas_call(
        kernel,
        out_shape=jax.ShapeDtypeStruct((rows, cout), out_dtype),
        grid_spec=pltpu.PrefetchScalarGridSpec(
            num_scalar_prefetch=0,
            grid=(nj, ni),
            in_specs=in_specs,
            out_specs=pl.BlockSpec((tm, tn), lambda j, i: (i, j)),
        ),
        compiler_params=_compiler_params(resident, ("parallel", "parallel")),
        cost_estimate=pl.CostEstimate(flops=int(4 * rows * cout),
                                      transcendentals=0,
                                      bytes_accessed=int(bytes_accessed)),
    )(*args)


# -----------------------------------------------------------------------------
# conv (as matmul) + BN (+ReLU / +residual) = pass1 + tiny folding + pass2
# -----------------------------------------------------------------------------
def conv_bn(x2d, w2d, gamma, beta, *, relu, residual=None, out_dtype=_IO_DTYPE):
    y, mean, var = matmul_stats(x2d, w2d)
    scale = gamma * jax.lax.rsqrt(var + EPS)    # tiny (C,) folding in wrapper
    bias = beta - mean * scale
    return scale_bias_act(y, scale, bias, relu=relu,
                          residual=residual, out_dtype=out_dtype)


# -----------------------------------------------------------------------------
# Glue: im2col for the 3x3 conv (bf16 patches; matmul happens in-kernel)
# TODO(synk): replace the HBM-materialized im2col with in-kernel 9-tap
# accumulation over haloed row tiles (manual DMA) to cut conv2 HBM reads ~9x.
# -----------------------------------------------------------------------------
def _im2col_3x3(x_nhwc, stride):
    n, h, w, c = x_nhwc.shape
    xp = jnp.pad(x_nhwc, ((0, 0), (1, 1), (1, 1), (0, 0)))
    hout = (h + 2 - 3) // stride + 1
    wout = (w + 2 - 3) // stride + 1
    taps = []
    for dh in range(3):
        for dw in range(3):
            taps.append(
                xp[:, dh:dh + (hout - 1) * stride + 1:stride,
                      dw:dw + (wout - 1) * stride + 1:stride, :]
            )
    # Patch ordering is (kh, kw, Cin) -> matches the weight reshape below.
    patches = jnp.concatenate(taps, axis=-1)
    return patches.reshape(n * hout * wout, 9 * c), hout, wout


# -----------------------------------------------------------------------------
# BottleNeck forward
# -----------------------------------------------------------------------------
def bottleneck_forward(x_nchw, params, stride):
    # TODO(synk): fold the NCHW<->NHWC transposes and the strided downsample
    # slice into BlockSpec index maps instead of wrapper-side copies.
    x = jnp.transpose(x_nchw, (0, 2, 3, 1))          # NCHW -> NHWC
    n, h, w, cin = x.shape
    x_bf = x.astype(_IO_DTYPE)

    w1 = params["w1"]                                 # (planes, cin, 1, 1)
    planes = w1.shape[0]
    cexp = 4 * planes

    # conv1 (1x1) + bn1 + relu
    a = conv_bn(
        x_bf.reshape(n * h * w, cin),
        w1.reshape(planes, cin).T.astype(_IO_DTYPE),
        params["g1"], params["b1"], relu=True,
    ).reshape(n, h, w, planes)

    # conv2 (3x3, stride, pad=1) + bn2 + relu  (im2col patches stay bf16)
    patches, hout, wout = _im2col_3x3(a, stride)
    w2 = jnp.transpose(params["w2"], (2, 3, 1, 0)).reshape(9 * planes, planes)
    b = conv_bn(patches, w2.astype(_IO_DTYPE),
                params["g2"], params["b2"], relu=True)

    # downsample branch (1x1 conv with stride + BN) or identity
    if stride != 1 or cin != cexp:
        xs = x_bf[:, ::stride, ::stride, :].reshape(n * hout * wout, cin)
        wd = params["wd"].reshape(cexp, cin).T.astype(_IO_DTYPE)
        res = conv_bn(xs, wd, params["gd"], params["bd"], relu=False)
    else:
        res = x_bf.reshape(n * hout * wout, cin)

    # conv3 (1x1) + bn3 + residual add + relu (fused epilogue, f32 output)
    w3 = params["w3"].reshape(cexp, planes).T.astype(_IO_DTYPE)
    out = conv_bn(b, w3, params["g3"], params["b3"], relu=True,
                  residual=res, out_dtype=jnp.float32)

    out = out.reshape(n, hout, wout, cexp)
    return jnp.transpose(out, (0, 3, 1, 2))           # NHWC -> NCHW


# -----------------------------------------------------------------------------
# Deterministic parameter init (synthetic; shapes follow nn.Module __init__)
# -----------------------------------------------------------------------------
def init_params(key, in_planes, planes):
    cexp = 4 * planes
    ks = jax.random.split(key, 8)
    return {
        "w1": 0.1 * jax.random.normal(ks[0], (planes, in_planes, 1, 1), jnp.float32),
        "w2": 0.1 * jax.random.normal(ks[1], (planes, planes, 3, 3), jnp.float32),
        "w3": 0.1 * jax.random.normal(ks[2], (cexp, planes, 1, 1), jnp.float32),
        "wd": 0.1 * jax.random.normal(ks[3], (cexp, in_planes, 1, 1), jnp.float32),
        "g1": 1.0 + 0.1 * jax.random.normal(ks[4], (planes,), jnp.float32),
        "b1": jnp.zeros((planes,), jnp.float32),
        "g2": 1.0 + 0.1 * jax.random.normal(ks[5], (planes,), jnp.float32),
        "b2": jnp.zeros((planes,), jnp.float32),
        "g3": 1.0 + 0.1 * jax.random.normal(ks[6], (cexp,), jnp.float32),
        "b3": jnp.zeros((cexp,), jnp.float32),
        "gd": 1.0 + 0.1 * jax.random.normal(ks[7], (cexp,), jnp.float32),
        "bd": jnp.zeros((cexp,), jnp.float32),
    }


if __name__ == "__main__":
    in_planes, planes, stride = 4, 8, 2
    key = jax.random.PRNGKey(0)
    kx, kp = jax.random.split(key)
    x = jax.random.normal(kx, (2, in_planes, 16, 16), jnp.float32)  # NCHW like PyTorch
    params = init_params(kp, in_planes, planes)

    out = bottleneck_forward(x, params, stride)
    out = jax.block_until_ready(out)

    assert out.shape == (2, 4 * planes, 8, 8), out.shape
    assert bool(jnp.all(jnp.isfinite(out)))
    assert bool(jnp.all(out >= 0.0))  # final ReLU
    print("KERNEL_OK")
</pallas_src>

<mosaic_0001>
module attributes {stable_mosaic.version = 11 : i64} {
  func.func @_matmul_stats_kernel(%arg0: i32, %arg1: i32, %arg2: memref<512x4xbf16, #tpu.memory_space<vmem>>, %arg3: memref<4x8xbf16, #tpu.memory_space<vmem>>, %arg4: memref<512x8xbf16, #tpu.memory_space<vmem>>, %arg5: memref<1x8xf32, #tpu.memory_space<vmem>>, %arg6: memref<1x8xf32, #tpu.memory_space<vmem>>) attributes {dimension_semantics = [#tpu.dimension_semantics<parallel>, #tpu.dimension_semantics<arbitrary>], iteration_bounds = array<i64: 1, 1>, scalar_prefetch = 0 : i64, scratch_operands = 0 : i64, tpu.core_type = #tpu.core_type<tc>, window_params = [{transform_indices = @transform_0, window_bounds = array<i64: 512, 4>}, {transform_indices = @transform_1, window_bounds = array<i64: 4, 8>}, {transform_indices = @transform_2, window_bounds = array<i64: 512, 8>}, {transform_indices = @transform_3, window_bounds = array<i64: 1, 8>}, {transform_indices = @transform_4, window_bounds = array<i64: 1, 8>}]} {
    %c0 = arith.constant 0 : index
    %c0_0 = arith.constant 0 : index
    %0 = vector.load %arg2[%c0, %c0_0] : memref<512x4xbf16, #tpu.memory_space<vmem>>, vector<512x4xbf16>
    %c0_1 = arith.constant 0 : index
    %c0_2 = arith.constant 0 : index
    %1 = vector.load %arg3[%c0_1, %c0_2] : memref<4x8xbf16, #tpu.memory_space<vmem>>, vector<4x8xbf16>
    %cst = arith.constant dense<0.000000e+00> : vector<512x8xf32>
    %2 = tpu.matmul %0, %1, %cst {dimension_numbers = #tpu.dot_dimension_numbers<[1], [0], [0], [1], [0, 0, 1, 1], [], []>} : vector<512x4xbf16>, vector<4x8xbf16>, vector<512x8xf32> -> vector<512x8xf32>
    %c0_i32 = arith.constant 0 : i32
    %3 = arith.cmpi eq, %arg1, %c0_i32 : i32
    %4 = arith.extui %3 : i1 to i32
    %c0_i32_3 = arith.constant 0 : i32
    %5 = arith.cmpi ne, %4, %c0_i32_3 : i32
    scf.if %5 {
      %cst_16 = arith.constant 0.000000e+00 : f32
      %19 = vector.broadcast %cst_16 : f32 to vector<1x8xf32>
      %c0_17 = arith.constant 0 : index
      %c0_18 = arith.constant 0 : index
      %20 = vector.load %arg5[%c0_17, %c0_18] : memref<1x8xf32, #tpu.memory_space<vmem>>, vector<1x8xf32>
      tpu.vector_store %arg5[%c0_17, %c0_18], %19 {strides = array<i32>} : memref<1x8xf32, #tpu.memory_space<vmem>>, vector<1x8xf32>,
      %cst_19 = arith.constant 0.000000e+00 : f32
      %21 = vector.broadcast %cst_19 : f32 to vector<1x8xf32>
      %c0_20 = arith.constant 0 : index
      %c0_21 = arith.constant 0 : index
      %22 = vector.load %arg6[%c0_20, %c0_21] : memref<1x8xf32, #tpu.memory_space<vmem>>, vector<1x8xf32>
      tpu.vector_store %arg6[%c0_20, %c0_21], %21 {strides = array<i32>} : memref<1x8xf32, #tpu.memory_space<vmem>>, vector<1x8xf32>,
    } else {
    }
    %c0_4 = arith.constant 0 : index
    %c0_5 = arith.constant 0 : index
    %6 = vector.load %arg5[%c0_4, %c0_5] : memref<1x8xf32, #tpu.memory_space<vmem>>, vector<1x8xf32>
    %cst_6 = arith.constant dense<0.000000e+00> : vector<8xf32>
    %7 = vector.multi_reduction <add>, %2, %cst_6 [0] : vector<512x8xf32> to vector<8xf32>
    %8 = vector.shape_cast %7 : vector<8xf32> to vector<1x8xf32>
    %9 = arith.addf %6, %8 : vector<1x8xf32>
    %c0_7 = arith.constant 0 : index
    %c0_8 = arith.constant 0 : index
    %10 = vector.load %arg5[%c0_7, %c0_8] : memref<1x8xf32, #tpu.memory_space<vmem>>, vector<1x8xf32>
    tpu.vector_store %arg5[%c0_7, %c0_8], %9 {strides = array<i32>} : memref<1x8xf32, #tpu.memory_space<vmem>>, vector<1x8xf32>,
    %c0_9 = arith.constant 0 : index
    %c0_10 = arith.constant 0 : index
    %11 = vector.load %arg6[%c0_9, %c0_10] : memref<1x8xf32, #tpu.memory_space<vmem>>, vector<1x8xf32>
    %12 = arith.mulf %2, %2 : vector<512x8xf32>
    %cst_11 = arith.constant dense<0.000000e+00> : vector<8xf32>
    %13 = vector.multi_reduction <add>, %12, %cst_11 [0] : vector<512x8xf32> to vector<8xf32>
    %14 = vector.shape_cast %13 : vector<8xf32> to vector<1x8xf32>
    %15 = arith.addf %11, %14 : vector<1x8xf32>
    %c0_12 = arith.constant 0 : index
    %c0_13 = arith.constant 0 : index
    %16 = vector.load %arg6[%c0_12, %c0_13] : memref<1x8xf32, #tpu.memory_space<vmem>>, vector<1x8xf32>
    tpu.vector_store %arg6[%c0_12, %c0_13], %15 {strides = array<i32>} : memref<1x8xf32, #tpu.memory_space<vmem>>, vector<1x8xf32>,
    %17 = arith.truncf %2 : vector<512x8xf32> to vector<512x8xbf16>
    %c0_14 = arith.constant 0 : index
    %c0_15 = arith.constant 0 : index
    %18 = vector.load %arg4[%c0_14, %c0_15] : memref<512x8xbf16, #tpu.memory_space<vmem>>, vector<512x8xbf16>
    tpu.vector_store %arg4[%c0_14, %c0_15], %17 {strides = array<i32>} : memref<512x8xbf16, #tpu.memory_space<vmem>>, vector<512x8xbf16>,
    return
  }
  func.func @transform_0(%arg0: i32, %arg1: i32) -> (i32, i32) {
    %c0_i32 = arith.constant 0 : i32
    %c0_i32_0 = arith.constant 0 : i32
    return %arg1, %c0_i32 : i32, i32
  }
  func.func @transform_1(%arg0: i32, %arg1: i32) -> (i32, i32) {
    %c0_i32 = arith.constant 0 : i32
    %c0_i32_0 = arith.constant 0 : i32
    return %c0_i32, %arg0 : i32, i32
  }
  func.func @transform_2(%arg0: i32, %arg1: i32) -> (i32, i32) {
    %c0_i32 = arith.constant 0 : i32
    return %arg1, %arg0 : i32, i32
  }
  func.func @transform_3(%arg0: i32, %arg1: i32) -> (i32, i32) {
    %c0_i32 = arith.constant 0 : i32
    %c0_i32_0 = arith.constant 0 : i32
    return %c0_i32, %arg0 : i32, i32
  }
  func.func @transform_4(%arg0: i32, %arg1: i32) -> (i32, i32) {
    %c0_i32 = arith.constant 0 : i32
    %c0_i32_0 = arith.constant 0 : i32
    return %c0_i32, %arg0 : i32, i32
  }
}

</mosaic_0001>

<bundles_post_ra>
// kernel: tpu_custom_call.1
= control target key start
LH: loop header
LB: loop body
LE: loop exit
PB: predicated region body
PF: predicated region fallthrough
CT: control target
= control target key end

     0   :  { %10 = vsyncpa [#allocation3], 0  ;;  %vm339_vm0 = vcmask 1041408   ;;  %vm242_vm1 = vcmask 31744   ;;  %s2511_s0 = inlined_call_operand.vmem [shape: bf16[512,4], index: 0, kind: input, shape index: {}]   ;;  %s2512_s1 = inlined_call_operand.vmem [shape: bf16[4,8], index: 1, kind: input, shape index: {}]   ;;  %s2513_s2 = inlined_call_operand.vmem [shape: bf16[512,8], index: 2, kind: output, shape index: {0}]   ;;  %s2514_s3 = inlined_call_operand.hbm [shape: f32[1,8], index: 3, kind: output, shape index: {1}]   ;;  %s2515_s4 = inlined_call_operand.hbm [shape: f32[1,8], index: 4, kind: output, shape index: {2}]  }
   0x1   :  { %v81_v0 = vld [vmem:[%s2512_s1] sm:$0x3]  ;;  %v1629_v3 = vld [vmem:[%s2511_s0 + $0x8] sm:$0xff]   ;;  %v1630_v4 = vld [vmem:[%s2511_s0 + $0x10] sm:$0xff]  }
   0x2   :  { %v1628_v1 = vld [vmem:[%s2511_s0] sm:$0xff]   ;;  %1623 = vmatprep.subr.msk.bf16.mxu0 %vm339_vm0, %v81_v0  ;;  %v341_v2 = vsel %vm339_vm0, %v81_v0, 0  ;;  %1624 = vmatprep.subr.msk.bf16.mxu1 %vm339_vm0, %v81_v0  ;;  %v1631_v5 = vld [vmem:[%s2511_s0 + $0x18] sm:$0xff]   ;;  %v1633_v7 = vld [vmem:[%s2511_s0 + $0x28] sm:$0xff]  }
   0x3   :  { %1556 = vmatpush3.bf16.msra.mxu0 %v341_v2  ;;  %1557 = vmatprep.mubr.msk.bf16.mxu0 %vm242_vm1, %v1628_v1  ;;  %v1632_v6 = vld [vmem:[%s2511_s0 + $0x20] sm:$0xff]   ;;  %v1634_v8 = vld [vmem:[%s2511_s0 + $0x30] sm:$0xff]   ;;  %v1645_v10 = vld [vmem:[%s2511_s0 + $0x88] sm:$0xff]  }
   0x4   :  { %1622 = vmatpush3.bf16.msra.mxu1 %v341_v2  ;;  %v1644_v9 = vld [vmem:[%s2511_s0 + $0x80] sm:$0xff]   ;;  %v1646_v11 = vld [vmem:[%s2511_s0 + $0x90] sm:$0xff]   ;;  %v1635_v12 = vld [vmem:[%s2511_s0 + $0x38] sm:$0xff]  }
   0x5   :  { %1589 = vmatprep.mubr.msk.bf16.mxu1 %vm242_vm1, %v1644_v9  ;;  %v1647_v13 = vld [vmem:[%s2511_s0 + $0x98] sm:$0xff]   ;;  %v1648_v14 = vld [vmem:[%s2511_s0 + $0xa0] sm:$0xff]   ;;  %v1649_v16 = vld [vmem:[%s2511_s0 + $0xa8] sm:$0xff]  }
   0x6   :  { %1558 = vmatmul.mubr.msk.bf16.vlgmr.msra.gmra.mrb[0].mxu0 %vm242_vm1, %v1629_v3  ;;  %v1636_v15 = vld [vmem:[%s2511_s0 + $0x40] sm:$0xff]  }
   0x7   :  { %1561 = vmatprep.mubr.msk.bf16.mxu0 %vm242_vm1, %v1630_v4  ;;  %1590 = vmatmul.mubr.msk.bf16.vlgmr.msra.gmra.mrb[0].mxu1 %vm242_vm1, %v1645_v10 }
   0x8   :  { %1593 = vmatprep.mubr.msk.bf16.mxu1 %vm242_vm1, %v1646_v11 }
   0xe   :  { %1562 = vmatmul.mubr.msk.bf16.gmra.mrb[4].mxu0 %vm242_vm1, %v1631_v5 }
   0xf   :  { %1565 = vmatprep.mubr.msk.bf16.mxu0 %vm242_vm1, %v1632_v6  ;;  %1594 = vmatmul.mubr.msk.bf16.gmra.mrb[4].mxu1 %vm242_vm1, %v1647_v13 }
  0x10   :  { %1597 = vmatprep.mubr.msk.bf16.mxu1 %vm242_vm1, %v1648_v14 }
  0x16   :  { %1566 = vmatmul.mubr.msk.bf16.gmra.mrb[8].mxu0 %vm242_vm1, %v1633_v7 }
  0x17   :  { %1569 = vmatprep.mubr.msk.bf16.mxu0 %vm242_vm1, %v1634_v8 }
  0x1e   :  { %1570 = vmatmul.mubr.msk.bf16.gmra.mrb[12].mxu0 %vm242_vm1, %v1635_v12 }
  0x1f   :  { %1573 = vmatprep.mubr.msk.bf16.mxu0 %vm242_vm1, %v1636_v15 }
  0x20   :  { %11 = vsyncpa [#allocation5], 0  ;;  %v1637_v17 = vld [vmem:[%s2511_s0 + $0x48] sm:$0xff]   ;;  %v1650_v18 = vld [vmem:[%s2511_s0 + $0xb0] sm:$0xff]   ;;  %1598 = vmatmul.mubr.msk.bf16.gmra.mrb[8].mxu1 %vm242_vm1, %v1649_v16  ;;  %vm1233_vm2 = vcmask 60416   ;;  %vm640_vm3 = vcmask 64512  }
  0x21   :  { %v1638_v19 = vld [vmem:[%s2511_s0 + $0x50] sm:$0xff]   ;;  %1601 = vmatprep.mubr.msk.bf16.mxu1 %vm242_vm1, %v1650_v18  ;;  %v1651_v20 = vld [vmem:[%s2511_s0 + $0xb8] sm:$0xff]   ;;  %v1652_v22 = vld [vmem:[%s2511_s0 + $0xc0] sm:$0xff]   ;;  %vm636_vm4 = vcmask 57344   ;;  %v1708_v56 = vmov 0.0   ;;  %s1710_s16 = smov [#allocation4]  }
  0x22   :  { %v1639_v21 = vld [vmem:[%s2511_s0 + $0x58] sm:$0xff]   ;;  %v1640_v23 = vld [vmem:[%s2511_s0 + $0x60] sm:$0xff]   ;;  %v1653_v24 = vld [vmem:[%s2511_s0 + $0xc8] sm:$0xff]   ;;  %637 = vst.msk [vmem:[#allocation2] sm:$0x1] %vm636_vm4, %v1708_v56  ;;  %s1316_s17 = sshll.u32 %s1710_s16, 4  ;;  %s2478_s17 = int_to_ptr.vmem [resolvable:$true] %s1316_s17 }
  0x23   :  { %v1641_v25 = vld [vmem:[%s2511_s0 + $0x68] sm:$0xff]   ;;  %v1654_v26 = vld [vmem:[%s2511_s0 + $0xd0] sm:$0xff]   ;;  %v1655_v28 = vld [vmem:[%s2511_s0 + $0xd8] sm:$0xff]   ;;  %638 = vst.msk [vmem:[#allocation4] sm:$0x1] %vm636_vm4, %v1708_v56 }
  0x24   :  { %v1642_v27 = vld [vmem:[%s2511_s0 + $0x70] sm:$0xff]   ;;  %v1643_v29 = vld [vmem:[%s2511_s0 + $0x78] sm:$0xff]   ;;  %v1656_v30 = vld [vmem:[%s2511_s0 + $0xe0] sm:$0xff]  }
  0x25   :  { %v1657_v31 = vld [vmem:[%s2511_s0 + $0xe8] sm:$0xff]   ;;  %v1658_v32 = vld [vmem:[%s2511_s0 + $0xf0] sm:$0xff]   ;;  %v1659_v33 = vld [vmem:[%s2511_s0 + $0xf8] sm:$0xff]  }
  0x26   :  { %1574 = vmatmul.mubr.msk.bf16.gmra.mrb[16].mxu0 %vm242_vm1, %v1637_v17 }
  0x27   :  { %1577 = vmatprep.mubr.msk.bf16.mxu0 %vm242_vm1, %v1638_v19 }
  0x28   :  { %1602 = vmatmul.mubr.msk.bf16.gmra.mrb[12].mxu1 %vm242_vm1, %v1651_v20 }
  0x29   :  { %1605 = vmatprep.mubr.msk.bf16.mxu1 %vm242_vm1, %v1652_v22 }
  0x2e   :  { %1578 = vmatmul.mubr.msk.bf16.gmra.mrb[20].mxu0 %vm242_vm1, %v1639_v21 }
  0x2f   :  { %1581 = vmatprep.mubr.msk.bf16.mxu0 %vm242_vm1, %v1640_v23 }
  0x30   :  { %1606 = vmatmul.mubr.msk.bf16.gmra.mrb[16].mxu1 %vm242_vm1, %v1653_v24 }
  0x31   :  { %1609 = vmatprep.mubr.msk.bf16.mxu1 %vm242_vm1, %v1654_v26 }
  0x36   :  { %1582 = vmatmul.mubr.msk.bf16.gmra.mrb[24].mxu0 %vm242_vm1, %v1641_v25 }
  0x37   :  { %1585 = vmatprep.mubr.msk.bf16.mxu0 %vm242_vm1, %v1642_v27 }
  0x38   :  { %1610 = vmatmul.mubr.msk.bf16.gmra.mrb[20].mxu1 %vm242_vm1, %v1655_v28 }
  0x39   :  { %1613 = vmatprep.mubr.msk.bf16.mxu1 %vm242_vm1, %v1656_v30 }
  0x3e   :  { %1586 = vmatmul.mubr.msk.bf16.gmra.mrb[28].mxu0 %vm242_vm1, %v1643_v29 }
  0x40   :  { %1614 = vmatmul.mubr.msk.bf16.gmra.mrb[24].mxu1 %vm242_vm1, %v1657_v31 }
  0x41   :  { %1617 = vmatprep.mubr.msk.bf16.mxu1 %vm242_vm1, %v1658_v32 }
  0x48   :  { %1618 = vmatmul.mubr.msk.bf16.gmra.mrb[28].mxu1 %vm242_vm1, %v1659_v33 }
  0xd9   :  { %v1559_v34 = vpop.f32.mrb[0].mxu0 }
  0xda   :  { %v1460_v35 = vpack.c.bf16 %v1559_v34, %v1559_v34  ;;  %v377_v36 = vpop.f32.mrb[1].mxu0  ;;  %v780_v40 = vmul.f32 %v1559_v34, %v1559_v34  ;;  %v644_v49 = vsel %vm640_vm3, %v1559_v34, 0.0  ;;  %v1914_v17 = vpop.f32.mrb[0].mxu1 }
  0xdb   :  { %v778_v37 = vmul.f32 %v377_v36, %v377_v36  ;;  %v1458_v38 = vpack.c.bf16 %v377_v36, %v377_v36  ;;  %v1560_v39 = vpop.f32.mrb[2].mxu0  ;;  %v641_v43 = vsel %vm640_vm3, %v377_v36, 0.0  ;;  %v1916_v21 = vpop.f32.mrb[1].mxu1  ;;  %v1492_v26 = vpack.c.bf16 %v1914_v17, %v1914_v17 }
  0xdc   :  { %1236 = vst.msk [vmem:[%s2513_s2 + $0x8] sm:$0xf] %vm1233_vm2, %v1460_v35  ;;  %v1461_v41 = vpack.c.bf16 %v1560_v39, %v1560_v39  ;;  %v380_v42 = vpop.f32.mrb[3].mxu0  ;;  %v781_v47 = vmul.f32 %v1560_v39, %v1560_v39  ;;  %v845_v54 = vsel %vm640_vm3, %v780_v40, 0.0  ;;  %v646_v57 = vsel %vm640_vm3, %v1560_v39, 0.0  ;;  %v1922_v27 = vpop.f32.mrb[2].mxu1 }
  0xdd   :  { %1234 = vst.msk [vmem:[%s2513_s2] sm:$0xf] %vm1233_vm2, %v1458_v38  ;;  %v642_v44 = vsel %vm640_vm3, %v380_v42, 0.0  ;;  %v779_v45 = vmul.f32 %v380_v42, %v380_v42  ;;  %v1459_v46 = vpack.c.bf16 %v380_v42, %v380_v42  ;;  %v842_v50 = vsel %vm640_vm3, %v778_v37, 0.0  ;;  %v1925_v33 = vpop.f32.mrb[3].mxu1 }
  0xde   :  { %1237 = vst.msk [vmem:[%s2513_s2 + $0xc] sm:$0xf] %vm1233_vm2, %v1461_v41  ;;  %v643_v48 = vadd.f32 %v642_v44, %v641_v43  ;;  %v847_v58 = vsel %vm640_vm3, %v781_v47, 0.0  ;;  %1268 = vst.msk [vmem:[%s2513_s2 + $0x88] sm:$0xf] %vm1233_vm2, %v1492_v26 }
  0xdf   :  { %v843_v51 = vsel %vm640_vm3, %v779_v45, 0.0  ;;  %1235 = vst.msk [vmem:[%s2513_s2 + $0x4] sm:$0xf] %vm1233_vm2, %v1459_v46 }
  0xe0   :  { %v645_v52 = vadd.f32 %v644_v49, %v643_v48  ;;  %v844_v53 = vadd.f32 %v843_v51, %v842_v50  ;;  %v1490_v50 = vpack.c.bf16 %v1916_v21, %v1916_v21 }
  0xe1   :  { %v1563_v55 = vpop.f32.mrb[4].mxu0 }
  0xe2   :  { %v846_v59 = vadd.f32 %v845_v54, %v844_v53  ;;  %v1464_v60 = vpack.c.bf16 %v1563_v55, %v1563_v55  ;;  %v393_v61 = vpop.f32.mrb[5].mxu0  ;;  %v647_v62 = vadd.f32 %v646_v57, %v645_v52  ;;  %v784_v9 = vmul.f32 %v1563_v55, %v1563_v55  ;;  %v1954_v51 = vpop.f32.mrb[4].mxu1  ;;  %1266 = vst.msk [vmem:[%s2513_s2 + $0x80] sm:$0xf] %vm1233_vm2, %v1490_v50 }
  0xe3   :  { %v648_v63 = vsel %vm640_vm3, %v393_v61, 0.0  ;;  %v782_v0 = vmul.f32 %v393_v61, %v393_v61  ;;  %v1462_v1 = vpack.c.bf16 %v393_v61, %v393_v61  ;;  %v1564_v2 = vpop.f32.mrb[6].mxu0  ;;  %v652_v14 = vsel %vm640_vm3, %v1563_v55, 0.0  ;;  %v1958_v56 = vpop.f32.mrb[5].mxu1 }
  0xe4   :  { %1240 = vst.msk [vmem:[%s2513_s2 + $0x18] sm:$0xf] %vm1233_vm2, %v1464_v60  ;;  %v848_v3 = vadd.f32 %v847_v58, %v846_v59  ;;  %v396_v4 = vpop.f32.mrb[7].mxu0  ;;  %v649_v5 = vadd.f32 %v648_v63, %v647_v62  ;;  %v1465_v7 = vpack.c.bf16 %v1564_v2, %v1564_v2  ;;  %v785_v15 = vmul.f32 %v1564_v2, %v1564_v2  ;;  %v1966_v61 = vpop.f32.mrb[6].mxu1 }
  0xe5   :  { %v849_v6 = vsel %vm640_vm3, %v782_v0, 0.0  ;;  %1238 = vst.msk [vmem:[%s2513_s2 + $0x10] sm:$0xf] %vm1233_vm2, %v1462_v1  ;;  %v650_v8 = vsel %vm640_vm3, %v396_v4, 0.0  ;;  %v783_v11 = vmul.f32 %v396_v4, %v396_v4  ;;  %v1463_v12 = vpack.c.bf16 %v396_v4, %v396_v4 }
  0xe6   :  { %v850_v10 = vadd.f32 %v849_v6, %v848_v3  ;;  %1241 = vst.msk [vmem:[%s2513_s2 + $0x1c] sm:$0xf] %vm1233_vm2, %v1465_v7  ;;  %v651_v13 = vadd.f32 %v650_v8, %v649_v5  ;;  %v853_v22 = vsel %vm640_vm3, %v784_v9, 0.0  ;;  %v654_v23 = vsel %vm640_vm3, %v1564_v2, 0.0  ;;  %v1973_v3 = vpop.f32.mrb[7].mxu1 }
  0xe7   :  { %v851_v16 = vsel %vm640_vm3, %v783_v11, 0.0  ;;  %1239 = vst.msk [vmem:[%s2513_s2 + $0x14] sm:$0xf] %vm1233_vm2, %v1463_v12  ;;  %v855_v34 = vsel %vm640_vm3, %v785_v15, 0.0  ;;  %v1493_v55 = vpack.c.bf16 %v1922_v27, %v1922_v27 }
  0xe8   :  { %v653_v18 = vadd.f32 %v652_v14, %v651_v13  ;;  %v852_v19 = vadd.f32 %v851_v16, %v850_v10 }
  0xe9   :  { %v1567_v20 = vpop.f32.mrb[8].mxu0  ;;  %1269 = vst.msk [vmem:[%s2513_s2 + $0x8c] sm:$0xf] %vm1233_vm2, %v1493_v55 }
  0xea   :  { %v1468_v24 = vpack.c.bf16 %v1567_v20, %v1567_v20  ;;  %v409_v25 = vpop.f32.mrb[9].mxu0  ;;  %v854_v28 = vadd.f32 %v853_v22, %v852_v19  ;;  %v655_v29 = vadd.f32 %v654_v23, %v653_v18  ;;  %v788_v41 = vmul.f32 %v1567_v20, %v1567_v20 }
  0xeb   :  { %v656_v30 = vsel %vm640_vm3, %v409_v25, 0.0  ;;  %v786_v31 = vmul.f32 %v409_v25, %v409_v25  ;;  %v1568_v32 = vpop.f32.mrb[10].mxu0  ;;  %v1466_v35 = vpack.c.bf16 %v409_v25, %v409_v25  ;;  %v660_v47 = vsel %vm640_vm3, %v1567_v20, 0.0 }
  0xec   :  { %1244 = vst.msk [vmem:[%s2513_s2 + $0x28] sm:$0xf] %vm1233_vm2, %v1468_v24  ;;  %v412_v36 = vpop.f32.mrb[11].mxu0  ;;  %v657_v37 = vadd.f32 %v656_v30, %v655_v29  ;;  %v856_v38 = vadd.f32 %v855_v34, %v854_v28  ;;  %v1469_v40 = vpack.c.bf16 %v1568_v32, %v1568_v32  ;;  %v789_v48 = vmul.f32 %v1568_v32, %v1568_v32 }
  0xed   :  { %v857_v39 = vsel %vm640_vm3, %v786_v31, 0.0  ;;  %1242 = vst.msk [vmem:[%s2513_s2 + $0x20] sm:$0xf] %vm1233_vm2, %v1466_v35  ;;  %v658_v42 = vsel %vm640_vm3, %v412_v36, 0.0  ;;  %v787_v43 = vmul.f32 %v412_v36, %v412_v36  ;;  %v1467_v44 = vpack.c.bf16 %v412_v36, %v412_v36 }
  0xee   :  { %v858_v45 = vadd.f32 %v857_v39, %v856_v38  ;;  %1245 = vst.msk [vmem:[%s2513_s2 + $0x2c] sm:$0xf] %vm1233_vm2, %v1469_v40  ;;  %v659_v46 = vadd.f32 %v658_v42, %v657_v37  ;;  %v861_v57 = vsel %vm640_vm3, %v788_v41, 0.0  ;;  %v662_v58 = vsel %vm640_vm3, %v1568_v32, 0.0 }
  0xef   :  { %v859_v49 = vsel %vm640_vm3, %v787_v43, 0.0  ;;  %1243 = vst.msk [vmem:[%s2513_s2 + $0x24] sm:$0xf] %vm1233_vm2, %v1467_v44  ;;  %v863_v4 = vsel %vm640_vm3, %v789_v48, 0.0  ;;  %v1491_v22 = vpack.c.bf16 %v1925_v33, %v1925_v33  ;;  %v1496_v28 = vpack.c.bf16 %v1954_v51, %v1954_v51 }
  0xf0   :  { %v661_v52 = vadd.f32 %v660_v47, %v659_v46  ;;  %v860_v53 = vadd.f32 %v859_v49, %v858_v45 }
  0xf1   :  { %v1571_v54 = vpop.f32.mrb[12].mxu0  ;;  %1267 = vst.msk [vmem:[%s2513_s2 + $0x84] sm:$0xf] %vm1233_vm2, %v1491_v22  ;;  %1272 = vst.msk [vmem:[%s2513_s2 + $0x98] sm:$0xf] %vm1233_vm2, %v1496_v28 }
  0xf2   :  { %v1472_v59 = vpack.c.bf16 %v1571_v54, %v1571_v54  ;;  %v425_v60 = vpop.f32.mrb[13].mxu0  ;;  %v862_v62 = vadd.f32 %v861_v57, %v860_v53  ;;  %v663_v63 = vadd.f32 %v662_v58, %v661_v52  ;;  %v792_v11 = vmul.f32 %v1571_v54, %v1571_v54 }
  0xf3   :  { %v664_v0 = vsel %vm640_vm3, %v425_v60, 0.0  ;;  %v790_v1 = vmul.f32 %v425_v60, %v425_v60  ;;  %v1572_v2 = vpop.f32.mrb[14].mxu0  ;;  %v1470_v5 = vpack.c.bf16 %v425_v60, %v425_v60  ;;  %v668_v18 = vsel %vm640_vm3, %v1571_v54, 0.0  ;;  %v1998_v23 = vpop.f32.mrb[8].mxu1 }
  0xf4   :  { %1248 = vst.msk [vmem:[%s2513_s2 + $0x38] sm:$0xf] %vm1233_vm2, %v1472_v59  ;;  %v428_v6 = vpop.f32.mrb[15].mxu0  ;;  %v665_v7 = vadd.f32 %v664_v0, %v663_v63  ;;  %v864_v8 = vadd.f32 %v863_v4, %v862_v62  ;;  %v1473_v10 = vpack.c.bf16 %v1572_v2, %v1572_v2  ;;  %v793_v19 = vmul.f32 %v1572_v2, %v1572_v2  ;;  %v2002_v29 = vpop.f32.mrb[9].mxu1 }
  0xf5   :  { %v865_v9 = vsel %vm640_vm3, %v790_v1, 0.0  ;;  %1246 = vst.msk [vmem:[%s2513_s2 + $0x30] sm:$0xf] %vm1233_vm2, %v1470_v5  ;;  %v666_v12 = vsel %vm640_vm3, %v428_v6, 0.0  ;;  %v791_v13 = vmul.f32 %v428_v6, %v428_v6  ;;  %v1471_v14 = vpack.c.bf16 %v428_v6, %v428_v6  ;;  %v2010_v35 = vpop.f32.mrb[10].mxu1 }
  0xf6   :  { %v866_v15 = vadd.f32 %v865_v9, %v864_v8  ;;  %1249 = vst.msk [vmem:[%s2513_s2 + $0x3c] sm:$0xf] %vm1233_vm2, %v1473_v10  ;;  %v667_v16 = vadd.f32 %v666_v12, %v665_v7  ;;  %v869_v30 = vsel %vm640_vm3, %v792_v11, 0.0  ;;  %v670_v31 = vsel %vm640_vm3, %v1572_v2, 0.0  ;;  %v2017_v41 = vpop.f32.mrb[11].mxu1 }
  0xf7   :  { %v867_v20 = vsel %vm640_vm3, %v791_v13, 0.0  ;;  %1247 = vst.msk [vmem:[%s2513_s2 + $0x34] sm:$0xf] %vm1233_vm2, %v1471_v14  ;;  %v871_v42 = vsel %vm640_vm3, %v793_v19, 0.0  ;;  %v1494_v60 = vpack.c.bf16 %v1958_v56, %v1958_v56  ;;  %v1497_v2 = vpack.c.bf16 %v1966_v61, %v1966_v61 }
  0xf8   :  { %v669_v24 = vadd.f32 %v668_v18, %v667_v16  ;;  %v868_v25 = vadd.f32 %v867_v20, %v866_v15 }
  0xf9   :  { %v1575_v26 = vpop.f32.mrb[16].mxu0  ;;  %1270 = vst.msk [vmem:[%s2513_s2 + $0x90] sm:$0xf] %vm1233_vm2, %v1494_v60  ;;  %1273 = vst.msk [vmem:[%s2513_s2 + $0x9c] sm:$0xf] %vm1233_vm2, %v1497_v2 }
  0xfa   :  { %v1476_v32 = vpack.c.bf16 %v1575_v26, %v1575_v26  ;;  %v441_v34 = vpop.f32.mrb[17].mxu0  ;;  %v870_v36 = vadd.f32 %v869_v30, %v868_v25  ;;  %v671_v37 = vadd.f32 %v670_v31, %v669_v24  ;;  %v796_v49 = vmul.f32 %v1575_v26, %v1575_v26 }
  0xfb   :  { %v672_v38 = vsel %vm640_vm3, %v441_v34, 0.0  ;;  %v794_v39 = vmul.f32 %v441_v34, %v441_v34  ;;  %v1576_v40 = vpop.f32.mrb[18].mxu0  ;;  %v1474_v43 = vpack.c.bf16 %v441_v34, %v441_v34  ;;  %v676_v57 = vsel %vm640_vm3, %v1575_v26, 0.0  ;;  %v2042_v62 = vpop.f32.mrb[12].mxu1 }
  0xfc   :  { %1252 = vst.msk [vmem:[%s2513_s2 + $0x48] sm:$0xf] %vm1233_vm2, %v1476_v32  ;;  %v444_v44 = vpop.f32.mrb[19].mxu0  ;;  %v673_v45 = vadd.f32 %v672_v38, %v671_v37  ;;  %v872_v46 = vadd.f32 %v871_v42, %v870_v36  ;;  %v1477_v48 = vpack.c.bf16 %v1576_v40, %v1576_v40  ;;  %v797_v58 = vmul.f32 %v1576_v40, %v1576_v40  ;;  %v2046_v4 = vpop.f32.mrb[13].mxu1 }
  0xfd   :  { %v873_v47 = vsel %vm640_vm3, %v794_v39, 0.0  ;;  %1250 = vst.msk [vmem:[%s2513_s2 + $0x40] sm:$0xf] %vm1233_vm2, %v1474_v43  ;;  %v674_v50 = vsel %vm640_vm3, %v444_v44, 0.0  ;;  %v795_v52 = vmul.f32 %v444_v44, %v444_v44  ;;  %v1475_v53 = vpack.c.bf16 %v444_v44, %v444_v44  ;;  %v2054_v9 = vpop.f32.mrb[14].mxu1 }
  0xfe   :  { %v874_v54 = vadd.f32 %v873_v47, %v872_v46  ;;  %1253 = vst.msk [vmem:[%s2513_s2 + $0x4c] sm:$0xf] %vm1233_vm2, %v1477_v48  ;;  %v675_v55 = vadd.f32 %v674_v50, %v673_v45  ;;  %v877_v5 = vsel %vm640_vm3, %v796_v49, 0.0  ;;  %v678_v6 = vsel %vm640_vm3, %v1576_v40, 0.0  ;;  %v2061_v15 = vpop.f32.mrb[15].mxu1 }
  0xff   :  { %v875_v59 = vsel %vm640_vm3, %v795_v52, 0.0  ;;  %1251 = vst.msk [vmem:[%s2513_s2 + $0x44] sm:$0xf] %vm1233_vm2, %v1475_v53  ;;  %v879_v16 = vsel %vm640_vm3, %v797_v58, 0.0  ;;  %v1495_v39 = vpack.c.bf16 %v1973_v3, %v1973_v3  ;;  %v1500_v45 = vpack.c.bf16 %v1998_v23, %v1998_v23 }
 0x100   :  { %v677_v63 = vadd.f32 %v676_v57, %v675_v55  ;;  %v876_v0 = vadd.f32 %v875_v59, %v874_v54 }
 0x101   :  { %v1579_v1 = vpop.f32.mrb[20].mxu0  ;;  %1271 = vst.msk [vmem:[%s2513_s2 + $0x94] sm:$0xf] %vm1233_vm2, %v1495_v39  ;;  %1276 = vst.msk [vmem:[%s2513_s2 + $0xa8] sm:$0xf] %vm1233_vm2, %v1500_v45 }
 0x102   :  { %v1480_v7 = vpack.c.bf16 %v1579_v1, %v1579_v1  ;;  %v457_v8 = vpop.f32.mrb[21].mxu0  ;;  %v878_v10 = vadd.f32 %v877_v5, %v876_v0  ;;  %v679_v11 = vadd.f32 %v678_v6, %v677_v63  ;;  %v800_v26 = vmul.f32 %v1579_v1, %v1579_v1 }
 0x103   :  { %v680_v12 = vsel %vm640_vm3, %v457_v8, 0.0  ;;  %v798_v13 = vmul.f32 %v457_v8, %v457_v8  ;;  %v1580_v14 = vpop.f32.mrb[22].mxu0  ;;  %v1478_v18 = vpack.c.bf16 %v457_v8, %v457_v8  ;;  %v684_v36 = vsel %vm640_vm3, %v1579_v1, 0.0  ;;  %v2086_v40 = vpop.f32.mrb[16].mxu1 }
 0x104   :  { %1256 = vst.msk [vmem:[%s2513_s2 + $0x58] sm:$0xf] %vm1233_vm2, %v1480_v7  ;;  %v460_v19 = vpop.f32.mrb[23].mxu0  ;;  %v681_v20 = vadd.f32 %v680_v12, %v679_v11  ;;  %v880_v22 = vadd.f32 %v879_v16, %v878_v10  ;;  %v1481_v25 = vpack.c.bf16 %v1580_v14, %v1580_v14  ;;  %v801_v37 = vmul.f32 %v1580_v14, %v1580_v14  ;;  %v2090_v46 = vpop.f32.mrb[17].mxu1 }
 0x105   :  { %v881_v24 = vsel %vm640_vm3, %v798_v13, 0.0  ;;  %1254 = vst.msk [vmem:[%s2513_s2 + $0x50] sm:$0xf] %vm1233_vm2, %v1478_v18  ;;  %v682_v28 = vsel %vm640_vm3, %v460_v19, 0.0  ;;  %v799_v30 = vmul.f32 %v460_v19, %v460_v19  ;;  %v1479_v31 = vpack.c.bf16 %v460_v19, %v460_v19  ;;  %v2098_v52 = vpop.f32.mrb[18].mxu1 }
 0x106   :  { %v882_v32 = vadd.f32 %v881_v24, %v880_v22  ;;  %1257 = vst.msk [vmem:[%s2513_s2 + $0x5c] sm:$0xf] %vm1233_vm2, %v1481_v25  ;;  %v683_v34 = vadd.f32 %v682_v28, %v681_v20  ;;  %v885_v47 = vsel %vm640_vm3, %v800_v26, 0.0  ;;  %v686_v48 = vsel %vm640_vm3, %v1580_v14, 0.0  ;;  %v2105_v59 = vpop.f32.mrb[19].mxu1 }
 0x107   :  { %v883_v38 = vsel %vm640_vm3, %v799_v30, 0.0  ;;  %1255 = vst.msk [vmem:[%s2513_s2 + $0x54] sm:$0xf] %vm1233_vm2, %v1479_v31  ;;  %v887_v60 = vsel %vm640_vm3, %v801_v37, 0.0  ;;  %v1498_v19 = vpack.c.bf16 %v2002_v29, %v2002_v29  ;;  %v1501_v26 = vpack.c.bf16 %v2010_v35, %v2010_v35 }
 0x108   :  { %v685_v42 = vadd.f32 %v684_v36, %v683_v34  ;;  %v884_v43 = vadd.f32 %v883_v38, %v882_v32 }
 0x109   :  { %v1583_v44 = vpop.f32.mrb[24].mxu0  ;;  %1274 = vst.msk [vmem:[%s2513_s2 + $0xa0] sm:$0xf] %vm1233_vm2, %v1498_v19  ;;  %1277 = vst.msk [vmem:[%s2513_s2 + $0xac] sm:$0xf] %vm1233_vm2, %v1501_v26  ;;  %v1502_v19 = vpack.c.bf16 %v2046_v4, %v2046_v4 }
 0x10a   :  { %v1484_v49 = vpack.c.bf16 %v1583_v44, %v1583_v44  ;;  %v473_v50 = vpop.f32.mrb[25].mxu0  ;;  %v886_v53 = vadd.f32 %v885_v47, %v884_v43  ;;  %v687_v54 = vadd.f32 %v686_v48, %v685_v42  ;;  %v804_v7 = vmul.f32 %v1583_v44, %v1583_v44 }
 0x10b   :  { %v688_v55 = vsel %vm640_vm3, %v473_v50, 0.0  ;;  %v802_v57 = vmul.f32 %v473_v50, %v473_v50  ;;  %v1584_v58 = vpop.f32.mrb[26].mxu0  ;;  %v1482_v63 = vpack.c.bf16 %v473_v50, %v473_v50  ;;  %v692_v14 = vsel %vm640_vm3, %v1583_v44, 0.0  ;;  %v2130_v20 = vpop.f32.mrb[20].mxu1  ;;  %1278 = vst.msk [vmem:[%s2513_s2 + $0xb0] sm:$0xf] %vm1233_vm2, %v1502_v19 }
 0x10c   :  { %1260 = vst.msk [vmem:[%s2513_s2 + $0x68] sm:$0xf] %vm1233_vm2, %v1484_v49  ;;  %v476_v0 = vpop.f32.mrb[27].mxu0  ;;  %v689_v1 = vadd.f32 %v688_v55, %v687_v54  ;;  %v888_v2 = vadd.f32 %v887_v60, %v886_v53  ;;  %v1485_v6 = vpack.c.bf16 %v1584_v58, %v1584_v58  ;;  %v805_v16 = vmul.f32 %v1584_v58, %v1584_v58  ;;  %v2134_v28 = vpop.f32.mrb[21].mxu1 }
 0x10d   :  { %v889_v5 = vsel %vm640_vm3, %v802_v57, 0.0  ;;  %1258 = vst.msk [vmem:[%s2513_s2 + $0x60] sm:$0xf] %vm1233_vm2, %v1482_v63  ;;  %v690_v8 = vsel %vm640_vm3, %v476_v0, 0.0  ;;  %v803_v10 = vmul.f32 %v476_v0, %v476_v0  ;;  %v1483_v11 = vpack.c.bf16 %v476_v0, %v476_v0  ;;  %v2142_v36 = vpop.f32.mrb[22].mxu1 }
 0x10e   :  { %v890_v12 = vadd.f32 %v889_v5, %v888_v2  ;;  %1261 = vst.msk [vmem:[%s2513_s2 + $0x6c] sm:$0xf] %vm1233_vm2, %v1485_v6  ;;  %v691_v13 = vadd.f32 %v690_v8, %v689_v1  ;;  %v893_v30 = vsel %vm640_vm3, %v804_v7, 0.0  ;;  %v694_v31 = vsel %vm640_vm3, %v1584_v58, 0.0  ;;  %v2149_v44 = vpop.f32.mrb[23].mxu1 }
 0x10f   :  { %v891_v18 = vsel %vm640_vm3, %v803_v10, 0.0  ;;  %1259 = vst.msk [vmem:[%s2513_s2 + $0x64] sm:$0xf] %vm1233_vm2, %v1483_v11  ;;  %v895_v45 = vsel %vm640_vm3, %v805_v16, 0.0  ;;  %v810_v1 = vmul.f32 %v1916_v21, %v1916_v21  ;;  %v1499_v7 = vpack.c.bf16 %v2017_v41, %v2017_v41 }
 0x110   :  { %v693_v22 = vadd.f32 %v692_v14, %v691_v13  ;;  %v892_v24 = vadd.f32 %v891_v18, %v890_v12  ;;  %v1504_v12 = vpack.c.bf16 %v2042_v62, %v2042_v62  ;;  %v704_v18 = vsel %vm640_vm3, %v1916_v21, 0.0 }
 0x111   :  { %v1587_v25 = vpop.f32.mrb[28].mxu0  ;;  %1275 = vst.msk [vmem:[%s2513_s2 + $0xa4] sm:$0xf] %vm1233_vm2, %v1499_v7  ;;  %v714_v19 = vsel %vm640_vm3, %v1973_v3, 0.0 }
 0x112   :  { %v1488_v32 = vpack.c.bf16 %v1587_v25, %v1587_v25  ;;  %v489_v34 = vpop.f32.mrb[29].mxu0  ;;  %v894_v37 = vadd.f32 %v893_v30, %v892_v24  ;;  %v695_v38 = vadd.f32 %v694_v31, %v693_v22  ;;  %v808_v55 = vmul.f32 %v1587_v25, %v1587_v25  ;;  %1280 = vst.msk [vmem:[%s2513_s2 + $0xb8] sm:$0xf] %vm1233_vm2, %v1504_v12 }
 0x113   :  { %v696_v39 = vsel %vm640_vm3, %v489_v34, 0.0  ;;  %v806_v42 = vmul.f32 %v489_v34, %v489_v34  ;;  %v1588_v43 = vpop.f32.mrb[30].mxu0  ;;  %v1486_v47 = vpack.c.bf16 %v489_v34, %v489_v34  ;;  %v700_v2 = vsel %vm640_vm3, %v1587_v25, 0.0  ;;  %v2176_v8 = vpop.f32.mrb[24].mxu1 }
 0x114   :  { %1264 = vst.msk [vmem:[%s2513_s2 + $0x78] sm:$0xf] %vm1233_vm2, %v1488_v32  ;;  %v492_v48 = vpop.f32.mrb[31].mxu0  ;;  %v697_v49 = vadd.f32 %v696_v39, %v695_v38  ;;  %v896_v50 = vadd.f32 %v895_v45, %v894_v37  ;;  %v1489_v54 = vpack.c.bf16 %v1588_v43, %v1588_v43  ;;  %v809_v5 = vmul.f32 %v1588_v43, %v1588_v43  ;;  %v2180_v13 = vpop.f32.mrb[25].mxu1 }
 0x115   :  { %v897_v53 = vsel %vm640_vm3, %v806_v42, 0.0  ;;  %1262 = vst.msk [vmem:[%s2513_s2 + $0x70] sm:$0xf] %vm1233_vm2, %v1486_v47  ;;  %v698_v57 = vsel %vm640_vm3, %v492_v48, 0.0  ;;  %v807_v58 = vmul.f32 %v492_v48, %v492_v48  ;;  %v1487_v60 = vpack.c.bf16 %v492_v48, %v492_v48  ;;  %v2192_v22 = vpop.f32.mrb[26].mxu1 }
 0x116   :  { %v898_v63 = vadd.f32 %v897_v53, %v896_v50  ;;  %1265 = vst.msk [vmem:[%s2513_s2 + $0x7c] sm:$0xf] %vm1233_vm2, %v1489_v54  ;;  %v699_v0 = vadd.f32 %v698_v57, %v697_v49  ;;  %v901_v14 = vsel %vm640_vm3, %v808_v55, 0.0  ;;  %v702_v16 = vsel %vm640_vm3, %v1588_v43, 0.0  ;;  %v2198_v26 = vpop.f32.mrb[27].mxu1 }
 0x117   :  { %v899_v6 = vsel %vm640_vm3, %v807_v58, 0.0  ;;  %1263 = vst.msk [vmem:[%s2513_s2 + $0x74] sm:$0xf] %vm1233_vm2, %v1487_v60  ;;  %v903_v21 = vsel %vm640_vm3, %v809_v5, 0.0  ;;  %v905_v30 = vsel %vm640_vm3, %v810_v1, 0.0  ;;  %v811_v31 = vmul.f32 %v1925_v33, %v1925_v33 }
 0x118   :  { %v701_v10 = vadd.f32 %v700_v2, %v699_v0  ;;  %v900_v11 = vadd.f32 %v899_v6, %v898_v63  ;;  %v1505_v32 = vpack.c.bf16 %v2054_v9, %v2054_v9  ;;  %v1503_v38 = vpack.c.bf16 %v2061_v15, %v2061_v15 }
 0x119   :  { %v812_v39 = vmul.f32 %v1914_v17, %v1914_v17  ;;  %v706_v42 = vsel %vm640_vm3, %v1925_v33, 0.0  ;;  %v1508_v43 = vpack.c.bf16 %v2086_v40, %v2086_v40  ;;  %v708_v45 = vsel %vm640_vm3, %v1914_v17, 0.0 }
 0x11a   :  { %v902_v24 = vadd.f32 %v901_v14, %v900_v11  ;;  %v703_v25 = vadd.f32 %v702_v16, %v701_v10  ;;  %1281 = vst.msk [vmem:[%s2513_s2 + $0xbc] sm:$0xf] %vm1233_vm2, %v1505_v32  ;;  %1279 = vst.msk [vmem:[%s2513_s2 + $0xb4] sm:$0xf] %vm1233_vm2, %v1503_v38  ;;  %v813_v33 = vmul.f32 %v1922_v27, %v1922_v27  ;;  %v907_v49 = vsel %vm640_vm3, %v811_v31, 0.0 }
 0x11b   :  { %v814_v50 = vmul.f32 %v1958_v56, %v1958_v56  ;;  %1284 = vst.msk [vmem:[%s2513_s2 + $0xc8] sm:$0xf] %vm1233_vm2, %v1508_v43  ;;  %v1506_v17 = vpack.c.bf16 %v2090_v46, %v2090_v46  ;;  %v2239_v53 = vpop.f32.mrb[28].mxu1  ;;  %v1509_v57 = vpack.c.bf16 %v2098_v52, %v2098_v52  ;;  %v909_v60 = vsel %vm640_vm3, %v812_v39, 0.0 }
 0x11c   :  { %v705_v34 = vadd.f32 %v704_v18, %v703_v25  ;;  %v904_v37 = vadd.f32 %v903_v21, %v902_v24  ;;  %v2243_v58 = vpop.f32.mrb[29].mxu1  ;;  %v710_v63 = vsel %vm640_vm3, %v1922_v27, 0.0  ;;  %v712_v0 = vsel %vm640_vm3, %v1958_v56, 0.0 }
 0x11d   :  { %1282 = vst.msk [vmem:[%s2513_s2 + $0xc0] sm:$0xf] %vm1233_vm2, %v1506_v17  ;;  %v1507_v1 = vpack.c.bf16 %v2105_v59, %v2105_v59  ;;  %v2256_v2 = vpop.f32.mrb[30].mxu1  ;;  %1285 = vst.msk [vmem:[%s2513_s2 + $0xcc] sm:$0xf] %vm1233_vm2, %v1509_v57  ;;  %v911_v56 = vsel %vm640_vm3, %v813_v33, 0.0  ;;  %v815_v10 = vmul.f32 %v1973_v3, %v1973_v3  ;;  %v1512_v11 = vpack.c.bf16 %v2130_v20, %v2130_v20 }
 0x11e   :  { %v906_v47 = vadd.f32 %v905_v30, %v904_v37  ;;  %v707_v48 = vadd.f32 %v706_v42, %v705_v34  ;;  %v2262_v27 = vpop.f32.mrb[31].mxu1  ;;  %v913_v7 = vsel %vm640_vm3, %v814_v50, 0.0  ;;  %v1510_v16 = vpack.c.bf16 %v2134_v28, %v2134_v28 }
 0x11f   :  { %1283 = vst.msk [vmem:[%s2513_s2 + $0xc4] sm:$0xf] %vm1233_vm2, %v1507_v1  ;;  %v816_v18 = vmul.f32 %v1954_v51, %v1954_v51  ;;  %1288 = vst.msk [vmem:[%s2513_s2 + $0xd8] sm:$0xf] %vm1233_vm2, %v1512_v11  ;;  %v1513_v24 = vpack.c.bf16 %v2142_v36, %v2142_v36  ;;  %v716_v25 = vsel %vm640_vm3, %v1954_v51, 0.0  ;;  %v817_v3 = vmul.f32 %v1966_v61, %v1966_v61 }
 0x120   :  { %v709_v54 = vadd.f32 %v708_v45, %v707_v48  ;;  %v908_v55 = vadd.f32 %v907_v49, %v906_v47  ;;  %1286 = vst.msk [vmem:[%s2513_s2 + $0xd0] sm:$0xf] %vm1233_vm2, %v1510_v16  ;;  %v915_v31 = vsel %vm640_vm3, %v815_v10, 0.0  ;;  %v818_v32 = vmul.f32 %v2002_v29, %v2002_v29 }
 0x121   :  { %1289 = vst.msk [vmem:[%s2513_s2 + $0xdc] sm:$0xf] %vm1233_vm2, %v1513_v24  ;;  %v1511_v51 = vpack.c.bf16 %v2149_v44, %v2149_v44  ;;  %v1516_v38 = vpack.c.bf16 %v2176_v8, %v2176_v8  ;;  %v917_v39 = vsel %vm640_vm3, %v816_v18, 0.0  ;;  %v718_v42 = vsel %vm640_vm3, %v1966_v61, 0.0 }
 0x122   :  { %v910_v5 = vadd.f32 %v909_v60, %v908_v55  ;;  %v711_v6 = vadd.f32 %v710_v63, %v709_v54  ;;  %v720_v43 = vsel %vm640_vm3, %v2002_v29, 0.0  ;;  %v1514_v45 = vpack.c.bf16 %v2180_v13, %v2180_v13 }
 0x123   :  { %1287 = vst.msk [vmem:[%s2513_s2 + $0xd4] sm:$0xf] %vm1233_vm2, %v1511_v51  ;;  %1292 = vst.msk [vmem:[%s2513_s2 + $0xe8] sm:$0xf] %vm1233_vm2, %v1516_v38  ;;  %v919_v61 = vsel %vm640_vm3, %v817_v3, 0.0  ;;  %v921_v33 = vsel %vm640_vm3, %v818_v32, 0.0  ;;  %v819_v29 = vmul.f32 %v2017_v41, %v2017_v41  ;;  %v1517_v49 = vpack.c.bf16 %v2192_v22, %v2192_v22 }
 0x124   :  { %v713_v12 = vadd.f32 %v712_v0, %v711_v6  ;;  %v912_v14 = vadd.f32 %v911_v56, %v910_v5  ;;  %1290 = vst.msk [vmem:[%s2513_s2 + $0xe0] sm:$0xf] %vm1233_vm2, %v1514_v45  ;;  %v1515_v54 = vpack.c.bf16 %v2198_v26, %v2198_v26  ;;  %v820_v55 = vmul.f32 %v1998_v23, %v1998_v23 }
 0x125   :  { %v722_v57 = vsel %vm640_vm3, %v2017_v41, 0.0  ;;  %1293 = vst.msk [vmem:[%s2513_s2 + $0xec] sm:$0xf] %vm1233_vm2, %v1517_v49  ;;  %v1520_v60 = vpack.c.bf16 %v2239_v53, %v2239_v53  ;;  %v724_v63 = vsel %vm640_vm3, %v1998_v23, 0.0  ;;  %v821_v41 = vmul.f32 %v2010_v35, %v2010_v35 }
 0x126   :  { %v914_v21 = vadd.f32 %v913_v7, %v912_v14  ;;  %v715_v30 = vadd.f32 %v714_v19, %v713_v12  ;;  %1291 = vst.msk [vmem:[%s2513_s2 + $0xe4] sm:$0xf] %vm1233_vm2, %v1515_v54  ;;  %v923_v5 = vsel %vm640_vm3, %v819_v29, 0.0  ;;  %v822_v6 = vmul.f32 %v2046_v4, %v2046_v4 }
 0x127   :  { %1296 = vst.msk [vmem:[%s2513_s2 + $0xf8] sm:$0xf] %vm1233_vm2, %v1520_v60  ;;  %v1518_v23 = vpack.c.bf16 %v2243_v58, %v2243_v58  ;;  %v1521_v10 = vpack.c.bf16 %v2256_v2, %v2256_v2  ;;  %v925_v11 = vsel %vm640_vm3, %v820_v55, 0.0  ;;  %v726_v12 = vsel %vm640_vm3, %v2010_v35, 0.0 }
 0x128   :  { %v717_v34 = vadd.f32 %v716_v25, %v715_v30  ;;  %v916_v37 = vadd.f32 %v915_v31, %v914_v21  ;;  %v728_v14 = vsel %vm640_vm3, %v2046_v4, 0.0  ;;  %v1519_v16 = vpack.c.bf16 %v2262_v27, %v2262_v27 }
 0x129   :  { %1294 = vst.msk [vmem:[%s2513_s2 + $0xf0] sm:$0xf] %vm1233_vm2, %v1518_v23  ;;  %1297 = vst.msk [vmem:[%s2513_s2 + $0xfc] sm:$0xf] %vm1233_vm2, %v1521_v10  ;;  %v927_v35 = vsel %vm640_vm3, %v821_v41, 0.0  ;;  %v929_v24 = vsel %vm640_vm3, %v822_v6, 0.0  ;;  %v823_v4 = vmul.f32 %v2061_v15, %v2061_v15  ;;  %v824_v30 = vmul.f32 %v2042_v62, %v2042_v62 }
 0x12a   :  { %v918_v47 = vadd.f32 %v917_v39, %v916_v37  ;;  %v719_v48 = vadd.f32 %v718_v42, %v717_v34  ;;  %1295 = vst.msk [vmem:[%s2513_s2 + $0xf4] sm:$0xf] %vm1233_vm2, %v1519_v16  ;;  %v730_v3 = vsel %vm640_vm3, %v2061_v15, 0.0  ;;  %v732_v51 = vsel %vm640_vm3, %v2042_v62, 0.0  ;;  %s1709_s2 = smov [#allocation2]  }
 0x12b   :  { %v825_v34 = vmul.f32 %v2054_v9, %v2054_v9  ;;  %v931_v37 = vsel %vm640_vm3, %v823_v4, 0.0  ;;  %v826_v38 = vmul.f32 %v2090_v46, %v2090_v46  ;;  %v734_v15 = vsel %vm640_vm3, %v2054_v9, 0.0  ;;  %s1306_s15 = sshll.u32 %s1709_s2, 4  ;;  %s1307_s15 = int_to_ptr.vmem [resolvable:$true] %s1306_s15 }
 0x12c   :  { %v721_v50 = vadd.f32 %v720_v43, %v719_v48  ;;  %v920_v17 = vadd.f32 %v919_v61, %v918_v47  ;;  %v933_v43 = vsel %vm640_vm3, %v824_v30, 0.0  ;;  %v736_v45 = vsel %vm640_vm3, %v2090_v46, 0.0  ;;  %s1660_s18 = scalar_lea.vmem %s1307_s15, 16  ;;  %s1664_s19 = scalar_lea.vmem %s1307_s15, 32 }
 0x12d   :  { %v935_v48 = vsel %vm640_vm3, %v825_v34, 0.0  ;;  %v937_v61 = vsel %vm640_vm3, %v826_v38, 0.0  ;;  %v738_v9 = vsel %vm640_vm3, %v2105_v59, 0.0  ;;  %v740_v46 = vsel %vm640_vm3, %v2086_v40, 0.0  ;;  %p1661_p0 = scmp.ne.s32.totalorder %s1307_s15, %s1660_s18  ;;  %p1665_p1 = scmp.lt.s32.totalorder %s1307_s15, %s1307_s15 }
 0x12e   :  { %v922_v0 = vadd.f32 %v921_v33, %v920_v17  ;;  %v723_v1 = vadd.f32 %v722_v57, %v721_v50  ;;  %v827_v33 = vmul.f32 %v2105_v59, %v2105_v59  ;;  %v828_v50 = vmul.f32 %v2086_v40, %v2086_v40  ;;  %p1666_p2 = scmp.lt.s32.totalorder %s1664_s19, %s1660_s18 }
 0x12f   :  { %v829_v55 = vmul.f32 %v2098_v52, %v2098_v52  ;;  %v830_v60 = vmul.f32 %v2134_v28, %v2134_v28  ;;  %v742_v59 = vsel %vm640_vm3, %v2098_v52, 0.0  ;;  %v744_v41 = vsel %vm640_vm3, %v2134_v28, 0.0 }
 0x130   :  { %v725_v56 = vadd.f32 %v724_v63, %v723_v1  ;;  %v924_v7 = vadd.f32 %v923_v5, %v922_v0  ;;  %v939_v57 = vsel %vm640_vm3, %v827_v33, 0.0  ;;  %v941_v1 = vsel %vm640_vm3, %v828_v50, 0.0  ;;  %p1667_p3 = por %p1666_p2, %p1665_p1 }
 0x131   :  { %v943_v6 = vsel %vm640_vm3, %v829_v55, 0.0  ;;  %v945_v23 = vsel %vm640_vm3, %v830_v60, 0.0  ;;  %v746_v52 = vsel %vm640_vm3, %v2149_v44, 0.0  ;;  %v748_v28 = vsel %vm640_vm3, %v2130_v20, 0.0 }
 0x132   :  { %v926_v18 = vadd.f32 %v925_v11, %v924_v7  ;;  %v727_v19 = vadd.f32 %v726_v12, %v725_v56  ;;  %v831_v56 = vmul.f32 %v2149_v44, %v2149_v44  ;;  %v832_v11 = vmul.f32 %v2130_v20, %v2130_v20  ;;  %p1668_p4 = pnand %p1667_p3, %p1661_p0 }
 0x133   :  { %v833_v16 = vmul.f32 %v2142_v36, %v2142_v36  ;;  %v750_v44 = vsel %vm640_vm3, %v2142_v36, 0.0  ;;  %v836_v34 = vmul.f32 %v2176_v8, %v2176_v8  ;;  %v754_v36 = vsel %vm640_vm3, %v2198_v26, 0.0 }
 0x134   :  { %v729_v25 = vadd.f32 %v728_v14, %v727_v19  ;;  %v928_v21 = vadd.f32 %v927_v35, %v926_v18  ;;  %v947_v18 = vsel %vm640_vm3, %v831_v56, 0.0  ;;  %v834_v19 = vmul.f32 %v2180_v13, %v2180_v13 }
 0x135   :  { %v949_v4 = vsel %vm640_vm3, %v832_v11, 0.0  ;;  %v951_v30 = vsel %vm640_vm3, %v833_v16, 0.0 }
 0x136   :  { %v930_v31 = vadd.f32 %v929_v24, %v928_v21  ;;  %v731_v32 = vadd.f32 %v730_v3, %v729_v25  ;;  %v752_v25 = vsel %vm640_vm3, %v2180_v13, 0.0  ;;  %v953_v3 = vsel %vm640_vm3, %v834_v19, 0.0 }
 0x137   :  { %v756_v13 = vsel %vm640_vm3, %v2176_v8, 0.0 }
 0x138   :  { %v733_v39 = vadd.f32 %v732_v51, %v731_v32  ;;  %v932_v42 = vadd.f32 %v931_v37, %v930_v31  ;;  %v835_v31 = vmul.f32 %v2198_v26, %v2198_v26  ;;  %v758_v26 = vsel %vm640_vm3, %v2192_v22, 0.0 }
 0x13a   :  { %v934_v47 = vadd.f32 %v933_v43, %v932_v42  ;;  %v735_v62 = vadd.f32 %v734_v15, %v733_v39  ;;  %v837_v39 = vmul.f32 %v2192_v22, %v2192_v22  ;;  %v955_v42 = vsel %vm640_vm3, %v835_v31, 0.0 }
 0x13b   :  { %v838_v43 = vmul.f32 %v2243_v58, %v2243_v58  ;;  %v762_v22 = vsel %vm640_vm3, %v2262_v27, 0.0 }
 0x13c   :  { %v737_v29 = vadd.f32 %v736_v45, %v735_v62  ;;  %v936_v49 = vadd.f32 %v935_v48, %v934_v47  ;;  %v957_v47 = vsel %vm640_vm3, %v836_v34, 0.0  ;;  %v760_v62 = vsel %vm640_vm3, %v2243_v58, 0.0 }
 0x13d   :  { %v961_v33 = vsel %vm640_vm3, %v838_v43, 0.0  ;;  %v764_v58 = vsel %vm640_vm3, %v2239_v53, 0.0 }
 0x13e   :  { %v938_v17 = vadd.f32 %v937_v61, %v936_v49  ;;  %v739_v54 = vadd.f32 %v738_v9, %v737_v29  ;;  %v959_v61 = vsel %vm640_vm3, %v837_v39, 0.0  ;;  %v839_v29 = vmul.f32 %v2262_v27, %v2262_v27 }
 0x13f   :  { %v840_v9 = vmul.f32 %v2239_v53, %v2239_v53 }
 0x140   :  { %v741_v63 = vadd.f32 %v740_v46, %v739_v54  ;;  %v940_v0 = vadd.f32 %v939_v57, %v938_v17  ;;  %v841_v46 = vmul.f32 %v2256_v2, %v2256_v2  ;;  %v963_v55 = vsel %vm640_vm3, %v839_v29, 0.0 }
 0x142   :  { %v942_v5 = vadd.f32 %v941_v1, %v940_v0  ;;  %v743_v40 = vadd.f32 %v742_v59, %v741_v63  ;;  %v965_v63 = vsel %vm640_vm3, %v840_v9, 0.0  ;;  %v766_v0 = vsel %vm640_vm3, %v2256_v2, 0.0  ;;  %v777_v2 = vld [vmem:[#allocation4] sm:$0x1] }
 0x143   :  { %v967_v27 = vsel %vm640_vm3, %v841_v46, 0.0 }
 0x144   :  { %v745_v7 = vadd.f32 %v744_v41, %v743_v40  ;;  %v944_v10 = vadd.f32 %v943_v6, %v942_v5 }
 0x146   :  { %v946_v12 = vadd.f32 %v945_v23, %v944_v10  ;;  %v747_v14 = vadd.f32 %v746_v52, %v745_v7  ;;  %v639_v52 = vld [vmem:[#allocation2] sm:$0x1] }
 0x148   :  { %v749_v35 = vadd.f32 %v748_v28, %v747_v14  ;;  %v948_v24 = vadd.f32 %v947_v18, %v946_v12 }
 0x14a   :  { %v950_v21 = vadd.f32 %v949_v4, %v948_v24  ;;  %v751_v20 = vadd.f32 %v750_v44, %v749_v35 }
 0x14c   :  { %v753_v32 = vadd.f32 %v752_v25, %v751_v20  ;;  %v952_v51 = vadd.f32 %v951_v30, %v950_v21 }
 0x14e   :  { %v954_v37 = vadd.f32 %v953_v3, %v952_v51  ;;  %v755_v38 = vadd.f32 %v754_v36, %v753_v32 }
 0x150   :  { %v757_v15 = vadd.f32 %v756_v13, %v755_v38  ;;  %v956_v45 = vadd.f32 %v955_v42, %v954_v37 }
 0x152   :  { %v958_v48 = vadd.f32 %v957_v47, %v956_v45  ;;  %v759_v8 = vadd.f32 %v758_v26, %v757_v15 }
 0x154   :  { %v761_v49 = vadd.f32 %v760_v62, %v759_v8  ;;  %v960_v50 = vadd.f32 %v959_v61, %v958_v48 }
 0x156   :  { %v962_v17 = vadd.f32 %v961_v33, %v960_v50  ;;  %v763_v54 = vadd.f32 %v762_v22, %v761_v49 }
 0x158   :  { %v765_v57 = vadd.f32 %v764_v58, %v763_v54  ;;  %v964_v60 = vadd.f32 %v963_v55, %v962_v17 }
 0x15a   :  { %v767_v1 = vadd.f32 %v766_v0, %v765_v57  ;;  %v966_v59 = vadd.f32 %v965_v63, %v964_v60 }
 0x15c   :  { %v768_v41 = vrot.slane %v767_v1, 4  ;;  %v968_v5 = vadd.f32 %v967_v27, %v966_v59 }
 0x15e   :  { %v769_v40 = vadd.f32 %v768_v41, %v767_v1  ;;  %v969_v53 = vrot.slane %v968_v5, 4 }
 0x160   :  { %v770_v6 = vrot.slane %v769_v40, 2  ;;  %v970_v23 = vadd.f32 %v969_v53, %v968_v5 }
 0x162   :  { %v771_v56 = vadd.f32 %v770_v6, %v769_v40  ;;  %v971_v7 = vrot.slane %v970_v23, 2 }
 0x164   :  { %v772_v10 = vrot.slane %v771_v56, 1  ;;  %v972_v11 = vadd.f32 %v971_v7, %v970_v23 }
 0x166   :  { %v773_v12 = vadd.f32 %v772_v10, %v771_v56  ;;  %v973_v14 = vrot.slane %v972_v11, 1 }
 0x168   :  { %v774_v28 = vadd.f32 %v773_v12, %v639_v52  ;;  %v974_v16 = vadd.f32 %v973_v14, %v972_v11 }
 0x16a   :  { %776 = vst.msk [vmem:[#allocation2] sm:$0x1] %vm636_vm4, %v774_v28  ;;  %v975_v18 = vadd.f32 %v974_v16, %v777_v2 }
 0x16b   :  { %1671 = shalt.err (!%p1668_p4)
}
 0x16c   :  { %s1672_s22 = scalar_lea.hbm %s2514_s3, 16 }
 0x16d   :  { %p1673_p5 = scmp.ne.s32.totalorder %s2514_s3, %s1672_s22  ;;  %p1676_p6 = scmp.lt.u32.totalorder %s1672_s22, %s2514_s3 }
 0x16f   :  { %p1678_p7 = pnand %p1676_p6, %p1673_p5 }
 0x171   :  { %1681 = shalt.err (!%p1678_p7)
}
 0x172   :  { %1309 = dma.vmem_to_hbm [thread:$0]  %s1307_s15, 16, %s2514_s3, [#allocation3]   ;;  %976 = vst.msk [vmem:[#allocation4] sm:$0x1] %vm636_vm4, %v975_v18 }
 0x173   :  { %s1682_s0 = scalar_lea.vmem %s2478_s17, 16  ;;  %s1686_s28 = scalar_lea.vmem %s2478_s17, 32 }
 0x174   :  { %p1683_p8 = scmp.ne.s32.totalorder %s2478_s17, %s1682_s0  ;;  %p1687_p9 = scmp.lt.s32.totalorder %s2478_s17, %s2478_s17 }
 0x175   :  { %p1688_p10 = scmp.lt.s32.totalorder %s1686_s28, %s1682_s0 }
 0x177   :  { %p1689_p11 = por %p1688_p10, %p1687_p9 }
 0x179   :  { %p1690_p12 = pnand %p1689_p11, %p1683_p8 }
 0x17b   :  { %1693 = shalt.err (!%p1690_p12)
}
 0x17c   :  { %s1694_s5 = scalar_lea.hbm %s2515_s4, 16 }
 0x17d   :  { %p1695_p13 = scmp.ne.s32.totalorder %s2515_s4, %s1694_s5  ;;  %p1698_p0 = scmp.lt.u32.totalorder %s1694_s5, %s2515_s4 }
 0x17f   :  { %p1700_p1 = pnand %p1698_p0, %p1695_p13 }
 0x181   :  { %1703 = shalt.err (!%p1700_p1)
}
 0x182   :  { %1319 = dma.vmem_to_hbm [thread:$0]  %s2478_s17, 16, %s2515_s4, [#allocation5]  }
 0x183   :  { %1704 = dma.done.wait [#allocation3], 16  }
 0x184   :  { %1705 = vsyncadd [#allocation3], 4294967280 }
 0x185   :  { %1706 = dma.done.wait [#allocation5], 16  }
 0x186   :  { %1707 = vsyncadd [#allocation5], 4294967280 }
 0x187   :  { %1328 = vsyncpa [#allocation3], 1 }
 0x188   :  { %1329 = vsyncpa [#allocation5], 1 }

</bundles_post_ra>
